<compile_context>
chip_gen: v6e
topology: v6e:2x2x1
jax: 0.10.0
libtpu: 0.0.40
codegen_flags: <defaults>
</compile_context>

<pallas_src>
import jax
import jax.numpy as jnp
from jax import lax
from jax.experimental import pallas as pl
from jax.experimental.pallas import tpu as pltpu


def _round_up(n, m):
    return ((n + m - 1) // m) * m


def _vmem_limit_bytes():
    """Per-generation scoped-VMEM limit (v7x: 64 MiB physical, v5e/v6e: 128 MiB)."""
    try:
        cap = getattr(pltpu.get_tpu_info(), "vmem_capacity_bytes", None)
        if cap:
            return int(min(cap * 3 // 4, 96 * 1024 * 1024))
    except Exception:
        pass
    return 32 * 1024 * 1024


def _pick_t_block(T, Bp, Ep, Hp, Vp, vmem_limit, cap=64):
    """Largest serial T block (<= cap) whose working set fits the VMEM budget.

    The wrapper pads T up to a multiple of the chosen block with pad tokens, so there
    is no "exact divisor" cliff for odd / prime T.
    """
    budget = max(vmem_limit // 2, 4 * 1024 * 1024)
    bytes_fixed = (
        2 * 2 * (Ep * Hp + Hp * Hp + Hp * Vp)   # bf16 weights, x2 pipeline buffers
        + 2 * 4 * (Hp + Vp)                     # f32 biases
        + 4 * Bp * Hp                           # f32 hidden-state carry scratch
    )
    per_t = Bp * (
        2 * 2 * Ep      # bf16 emb block, double-buffered
        + 2 * 4 * Vp    # f32 logits block, double-buffered
        + 4 * Hp        # f32 z/h block scratch
    )
    t = max(min(T, cap), 1)
    while t > 1 and bytes_fixed + t * per_t > budget:
        t = max(t - 8, 1)
    return t


# ----------------------------------------------------------------------------
# Fused kernel: tanh-RNN recurrence + output projection, grid over serial T blocks.
# Hidden state is carried across grid steps in a VMEM scratch (accumulator pattern).
# ----------------------------------------------------------------------------
def lm_rnn_fused_kernel(emb_ref, wih_ref, whh_ref, b_ref, wout_ref, bout_ref,
                        out_ref, h_carry, h_blk):
    """One T-block of the recurrence + fused projection.

    emb_ref  : (Tb, Bp, Ep)  bf16 time-major embedding block
    wih_ref  : (Ep, Hp)      bf16 input->hidden weight (transposed vs torch)
    whh_ref  : (Hp, Hp)      bf16 hidden->hidden weight (transposed vs torch)
    b_ref    : (1, Hp)       f32 combined bias (b_ih + b_hh)
    wout_ref : (Hp, Vp)      bf16 output weight (transposed vs torch)
    bout_ref : (1, Vp)       f32 output bias
    out_ref  : (Tb, Bp, Vp)  f32 logits block
    h_carry  : (Bp, Hp)      f32 VMEM scratch, hidden state carried across T blocks
    h_blk    : (Tb, Bp, Hp)  f32 VMEM scratch, holds z then (in place) the h states
    """
    Tb, Bp, Ep = emb_ref.shape
    Hp = whh_ref.shape[0]
    Vp = out_ref.shape[-1]

    @pl.when(pl.program_id(0) == 0)
    def _():
        h_carry[...] = jnp.zeros_like(h_carry)

    # Hoisted batched input projection: one (Tb*Bp, Ep) @ (Ep, Hp) bf16 MXU matmul
    # (f32 accumulation) for the whole block, written into the h scratch which the
    # recurrence then overwrites in place (no separate z buffer).
    x = emb_ref[...].reshape(Tb * Bp, Ep)
    z = jnp.dot(x, wih_ref[...], preferred_element_type=jnp.float32) + b_ref[...]
    h_blk[...] = z.reshape(Tb, Bp, Hp)

    whh = whh_ref[...]  # bf16, resident

    # TODO(synk): hold W_hh stationary in the MXU across steps via
    # pltpu.matmul_push_rhs/matmul_acc_lhs/matmul_pop to shave the per-step RHS push.
    def step(t, h):
        h_new = jnp.tanh(
            jnp.dot(h.astype(whh.dtype), whh, preferred_element_type=jnp.float32)
            + h_blk[t]
        )
        h_blk[t] = h_new
        return h_new

    # Capped unroll: enough for the LLO scheduler to overlap tanh/stores of step t
    # with the MXU push of step t+1 without blowing up code size for large Tb.
    h_carry[...] = lax.fori_loop(0, Tb, step, h_carry[...], unroll=min(Tb, 8))

    # Fused output-projection epilogue: one lane-dense (Tb*Bp, Hp) @ (Hp, Vp) matmul.
    h2d = h_blk[...].reshape(Tb * Bp, Hp).astype(wout_ref.dtype)
    logits = (
        jnp.dot(h2d, wout_ref[...], preferred_element_type=jnp.float32)
        + bout_ref[...]
    )
    out_ref[...] = logits.reshape(Tb, Bp, Vp)


def lm_rnn_forward(input_ids, params, pad_index=0):
    """input_ids: (B, T) int32 token ids. Returns (B, V, T) float32 logits."""
    emb_table, w_ih, w_hh, b, w_out, b_out = params
    B, T = input_ids.shape
    V, E = emb_table.shape
    H = w_hh.shape[0]

    # ---- (8,128)-aligned padded dims -------------------------------------
    Bp = _round_up(B, 8)
    Ep = _round_up(E, 128)
    Hp = _round_up(H, 128)
    Vp = _round_up(V, 128)

    # Zero padding keeps the math exact: padded E/H columns stay exactly 0 through the
    # recurrence (tanh(0)=0); padded batch rows / V columns / T rows are sliced off.
    # bf16 operands for the MXU, f32 accumulation + f32 biases (review item #1).
    emb_table_p = jnp.pad(emb_table, ((0, 0), (0, Ep - E))).astype(jnp.bfloat16)
    w_ih_p = jnp.pad(w_ih, ((0, Ep - E), (0, Hp - H))).astype(jnp.bfloat16)
    w_hh_p = jnp.pad(w_hh, ((0, Hp - H), (0, Hp - H))).astype(jnp.bfloat16)
    b_p = jnp.pad(b, ((0, 0), (0, Hp - H))).astype(jnp.float32)
    w_out_p = jnp.pad(w_out, ((0, Hp - H), (0, Vp - V))).astype(jnp.bfloat16)
    b_out_p = jnp.pad(b_out, ((0, 0), (0, Vp - V))).astype(jnp.float32)

    # ---- block sizing / T padding (no degenerate-divisor cliff) ----------
    vmem_limit = _vmem_limit_bytes()
    t_blk = _pick_t_block(T, Bp, Ep, Hp, Vp, vmem_limit)
    Tp = _round_up(T, t_blk)

    # ---- glue: time-major embedding gather (transpose int32 ids, not f32 emb) ----
    # TODO(synk): for large V/E, move this gather into the kernel (scalar-prefetched
    # ids + per-row DMA from the table in pl.ANY) to avoid the HBM round trip.
    ids_p = jnp.pad(input_ids, ((0, Bp - B), (0, Tp - T)), constant_values=pad_index)
    ids_tm = ids_p.T                                   # (Tp, Bp) int32
    emb_tm = jnp.take(emb_table_p, ids_tm, axis=0)     # (Tp, Bp, Ep) bf16, time-major

    # ---- fused recurrence + projection, serial grid over T blocks --------
    # TODO(synk): on v7x with Bp >= 16, add a leading batch-parallel grid axis
    # (("parallel","arbitrary")) so both TensorCores share the recurrence.
    logits_tm = pl.pallas_call(
        lm_rnn_fused_kernel,
        out_shape=jax.ShapeDtypeStruct((Tp, Bp, Vp), jnp.float32),
        grid_spec=pltpu.PrefetchScalarGridSpec(
            num_scalar_prefetch=0,
            grid=(Tp // t_blk,),
            in_specs=[
                pl.BlockSpec((t_blk, Bp, Ep), lambda t: (t, 0, 0)),  # emb block
                pl.BlockSpec((Ep, Hp), lambda t: (0, 0)),            # W_ih (resident)
                pl.BlockSpec((Hp, Hp), lambda t: (0, 0)),            # W_hh (resident)
                pl.BlockSpec((1, Hp), lambda t: (0, 0)),             # bias (resident)
                pl.BlockSpec((Hp, Vp), lambda t: (0, 0)),            # W_out (resident)
                pl.BlockSpec((1, Vp), lambda t: (0, 0)),             # b_out (resident)
            ],
            out_specs=pl.BlockSpec((t_blk, Bp, Vp), lambda t: (t, 0, 0)),
            scratch_shapes=[
                pltpu.VMEM((Bp, Hp), jnp.float32),          # hidden-state carry
                pltpu.VMEM((t_blk, Bp, Hp), jnp.float32),   # z / h block (in-place)
            ],
        ),
        compiler_params=pltpu.CompilerParams(
            dimension_semantics=("arbitrary",),   # serial dependence across T blocks
            vmem_limit_bytes=vmem_limit,
        ),
    )(emb_tm, w_ih_p, w_hh_p, b_p, w_out_p, b_out_p)

    # ---- glue: un-pad and permute to PyTorch's (B, V, T) ------------------
    logits = logits_tm[:T, :B, :V]                 # (T, B, V)
    return jnp.transpose(logits, (1, 2, 0))        # (B, V, T)


# ----------------------------------------------------------------------------
# Parameters / pure-JAX reference
# ----------------------------------------------------------------------------
def init_params(key, vocab_size, emb_size, hidden_size, pad_index=0):
    k_emb, k_wih, k_whh, k_bih, k_bhh, k_wout, k_bout = jax.random.split(key, 7)
    s = 1.0 / jnp.sqrt(hidden_size)

    emb_table = jax.random.normal(k_emb, (vocab_size, emb_size), jnp.float32)
    emb_table = emb_table.at[pad_index].set(0.0)  # padding_idx row zeroed (nn.Embedding)

    # Stored pre-transposed relative to torch: torch W_ih is (H, E), we keep (E, H), etc.
    w_ih = jax.random.uniform(k_wih, (emb_size, hidden_size), jnp.float32, -s, s)
    w_hh = jax.random.uniform(k_whh, (hidden_size, hidden_size), jnp.float32, -s, s)
    b_ih = jax.random.uniform(k_bih, (1, hidden_size), jnp.float32, -s, s)
    b_hh = jax.random.uniform(k_bhh, (1, hidden_size), jnp.float32, -s, s)
    b = b_ih + b_hh

    w_out = jax.random.uniform(k_wout, (hidden_size, vocab_size), jnp.float32, -s, s)
    b_out = jax.random.uniform(k_bout, (1, vocab_size), jnp.float32, -s, s)
    return (emb_table, w_ih, w_hh, b, w_out, b_out)


def reference_forward(input_ids, params):
    """Pure-JAX f32 reference of LM_RNN.forward for verification."""
    emb_table, w_ih, w_hh, b, w_out, b_out = params
    emb = jnp.take(emb_table, input_ids, axis=0)  # (B, T, E)
    B, T, E = emb.shape
    H = w_hh.shape[0]

    def step(h, x_t):
        h_new = jnp.tanh(x_t @ w_ih + h @ w_hh + b)
        return h_new, h_new

    xs = jnp.transpose(emb, (1, 0, 2))  # (T, B, E)
    _, hs = lax.scan(step, jnp.zeros((B, H), jnp.float32), xs)  # (T, B, H)
    logits = hs @ w_out + b_out         # (T, B, V)
    return jnp.transpose(logits, (1, 2, 0))  # (B, V, T)


if __name__ == "__main__":
    VOCAB, EMB, HID, PAD = 64, 32, 32, 0

    key = jax.random.PRNGKey(0)
    k_params, k_ids1, k_ids2 = jax.random.split(key, 3)
    params = init_params(k_params, VOCAB, EMB, HID, pad_index=PAD)

    # bf16 MXU operands (f32 reference) -> loosened tolerance, per the review.
    ATOL = RTOL = 5e-2

    # Case 1: small shape consistent with the module (batch=2, seq=8).
    B1, T1 = 2, 8
    ids1 = jax.random.randint(k_ids1, (B1, T1), 0, VOCAB, dtype=jnp.int32)
    ids1 = ids1.at[:, -1].set(PAD)  # include padding tokens
    out1 = jax.block_until_ready(lm_rnn_forward(ids1, params, pad_index=PAD))
    assert out1.shape == (B1, VOCAB, T1), out1.shape
    ref1 = jax.block_until_ready(reference_forward(ids1, params))
    assert jnp.allclose(out1, ref1, atol=ATOL, rtol=RTOL), "mismatch vs JAX reference (case 1)"

    # Case 2: exercises batch padding and an odd T (T padded inside the wrapper).
    B2, T2 = 3, 24
    ids2 = jax.random.randint(k_ids2, (B2, T2), 0, VOCAB, dtype=jnp.int32)
    out2 = jax.block_until_ready(lm_rnn_forward(ids2, params, pad_index=PAD))
    assert out2.shape == (B2, VOCAB, T2), out2.shape
    ref2 = jax.block_until_ready(reference_forward(ids2, params))
    assert jnp.allclose(out2, ref2, atol=ATOL, rtol=RTOL), "mismatch vs JAX reference (case 2)"

    print("KERNEL_OK")
</pallas_src>

<mosaic_0001>
module attributes {stable_mosaic.version = 11 : i64} {
  func.func @lm_rnn_fused_kernel(%arg0: i32, %arg1: memref<8x8x128xbf16, #tpu.memory_space<vmem>>, %arg2: memref<128x128xbf16, #tpu.memory_space<vmem>>, %arg3: memref<128x128xbf16, #tpu.memory_space<vmem>>, %arg4: memref<1x128xf32, #tpu.memory_space<vmem>>, %arg5: memref<128x128xbf16, #tpu.memory_space<vmem>>, %arg6: memref<1x128xf32, #tpu.memory_space<vmem>>, %arg7: memref<8x8x128xf32, #tpu.memory_space<vmem>>, %arg8: memref<8x128xf32, #tpu.memory_space<vmem>>, %arg9: memref<8x8x128xf32, #tpu.memory_space<vmem>>) attributes {dimension_semantics = [#tpu.dimension_semantics<arbitrary>], iteration_bounds = array<i64: 1>, scalar_prefetch = 0 : i64, scratch_operands = 2 : i64, tpu.core_type = #tpu.core_type<tc>, window_params = [{transform_indices = @transform_0, window_bounds = array<i64: 8, 8, 128>}, {pipeline_mode = #tpu.pipeline_mode<synchronous>, transform_indices = @transform_1, window_bounds = array<i64: 128, 128>}, {pipeline_mode = #tpu.pipeline_mode<synchronous>, transform_indices = @transform_2, window_bounds = array<i64: 128, 128>}, {pipeline_mode = #tpu.pipeline_mode<synchronous>, transform_indices = @transform_3, window_bounds = array<i64: 1, 128>}, {pipeline_mode = #tpu.pipeline_mode<synchronous>, transform_indices = @transform_4, window_bounds = array<i64: 128, 128>}, {pipeline_mode = #tpu.pipeline_mode<synchronous>, transform_indices = @transform_5, window_bounds = array<i64: 1, 128>}, {transform_indices = @transform_6, window_bounds = array<i64: 8, 8, 128>}]} {
    %c0_i32 = arith.constant 0 : i32
    %0 = arith.cmpi eq, %arg0, %c0_i32 : i32
    %1 = arith.extui %0 : i1 to i32
    %c0_i32_0 = arith.constant 0 : i32
    %2 = arith.cmpi ne, %1, %c0_i32_0 : i32
    scf.if %2 {
      %cst_68 = arith.constant 0.000000e+00 : f32
      %113 = vector.broadcast %cst_68 : f32 to vector<8x128xf32>
      %c0_69 = arith.constant 0 : index
      %c0_70 = arith.constant 0 : index
      %114 = vector.load %arg8[%c0_69, %c0_70] : memref<8x128xf32, #tpu.memory_space<vmem>>, vector<8x128xf32>
      tpu.vector_store %arg8[%c0_69, %c0_70], %113 {strides = array<i32>} : memref<8x128xf32, #tpu.memory_space<vmem>>, vector<8x128xf32>,
    } else {
    }
    %c0 = arith.constant 0 : index
    %c0_1 = arith.constant 0 : index
    %c0_2 = arith.constant 0 : index
    %3 = vector.load %arg1[%c0, %c0_1, %c0_2] : memref<8x8x128xbf16, #tpu.memory_space<vmem>>, vector<8x8x128xbf16>
    %4 = vector.shape_cast %3 : vector<8x8x128xbf16> to vector<64x128xbf16>
    %c0_3 = arith.constant 0 : index
    %c0_4 = arith.constant 0 : index
    %5 = vector.load %arg2[%c0_3, %c0_4] : memref<128x128xbf16, #tpu.memory_space<vmem>>, vector<128x128xbf16>
    %cst = arith.constant dense<0.000000e+00> : vector<64x128xf32>
    %6 = tpu.matmul %4, %5, %cst {dimension_numbers = #tpu.dot_dimension_numbers<[1], [0], [0], [1], [0, 0, 1, 1], [], []>} : vector<64x128xbf16>, vector<128x128xbf16>, vector<64x128xf32> -> vector<64x128xf32>
    %c0_5 = arith.constant 0 : index
    %c0_6 = arith.constant 0 : index
    %7 = vector.load %arg4[%c0_5, %c0_6] : memref<1x128xf32, #tpu.memory_space<vmem>>, vector<1x128xf32>
    %8 = vector.broadcast %7 : vector<1x128xf32> to vector<64x128xf32>
    %9 = arith.addf %6, %8 : vector<64x128xf32>
    %10 = vector.shape_cast %9 : vector<64x128xf32> to vector<8x8x128xf32>
    %c0_7 = arith.constant 0 : index
    %c0_8 = arith.constant 0 : index
    %c0_9 = arith.constant 0 : index
    %11 = vector.load %arg9[%c0_7, %c0_8, %c0_9] : memref<8x8x128xf32, #tpu.memory_space<vmem>>, vector<8x8x128xf32>
    tpu.vector_store %arg9[%c0_7, %c0_8, %c0_9], %10 {strides = array<i32>} : memref<8x8x128xf32, #tpu.memory_space<vmem>>, vector<8x8x128xf32>,
    %c0_10 = arith.constant 0 : index
    %c0_11 = arith.constant 0 : index
    %12 = vector.load %arg3[%c0_10, %c0_11] : memref<128x128xbf16, #tpu.memory_space<vmem>>, vector<128x128xbf16>
    %c0_12 = arith.constant 0 : index
    %c0_13 = arith.constant 0 : index
    %13 = vector.load %arg8[%c0_12, %c0_13] : memref<8x128xf32, #tpu.memory_space<vmem>>, vector<8x128xf32>
    %c0_i32_14 = arith.constant 0 : i32
    %14 = arith.truncf %13 : vector<8x128xf32> to vector<8x128xbf16>
    %cst_15 = arith.constant dense<0.000000e+00> : vector<8x128xf32>
    %15 = tpu.matmul %14, %12, %cst_15 {dimension_numbers = #tpu.dot_dimension_numbers<[1], [0], [0], [1], [0, 0, 1, 1], [], []>} : vector<8x128xbf16>, vector<128x128xbf16>, vector<8x128xf32> -> vector<8x128xf32>
    %16 = arith.index_cast %c0_i32_14 : i32 to index
    %c0_16 = arith.constant 0 : index
    %c0_17 = arith.constant 0 : index
    %17 = vector.load %arg9[%16, %c0_16, %c0_17] : memref<8x8x128xf32, #tpu.memory_space<vmem>>, vector<1x8x128xf32>
    %18 = vector.shape_cast %17 : vector<1x8x128xf32> to vector<8x128xf32>
    %19 = arith.addf %15, %18 : vector<8x128xf32>
    %20 = math.tanh %19 : vector<8x128xf32>
    %21 = arith.index_cast %c0_i32_14 : i32 to index
    %c0_18 = arith.constant 0 : index
    %c0_19 = arith.constant 0 : index
    %22 = vector.load %arg9[%21, %c0_18, %c0_19] : memref<8x8x128xf32, #tpu.memory_space<vmem>>, vector<1x8x128xf32>
    %23 = vector.shape_cast %22 : vector<1x8x128xf32> to vector<8x128xf32>
    %24 = vector.shape_cast %20 : vector<8x128xf32> to vector<1x8x128xf32>
    tpu.vector_store %arg9[%21, %c0_18, %c0_19], %24 {strides = array<i32>} : memref<8x8x128xf32, #tpu.memory_space<vmem>>, vector<1x8x128xf32>,
    %c1_i32 = arith.constant 1 : i32
    %25 = arith.truncf %20 : vector<8x128xf32> to vector<8x128xbf16>
    %cst_20 = arith.constant dense<0.000000e+00> : vector<8x128xf32>
    %26 = tpu.matmul %25, %12, %cst_20 {dimension_numbers = #tpu.dot_dimension_numbers<[1], [0], [0], [1], [0, 0, 1, 1], [], []>} : vector<8x128xbf16>, vector<128x128xbf16>, vector<8x128xf32> -> vector<8x128xf32>
    %27 = arith.index_cast %c1_i32 : i32 to index
    %c0_21 = arith.constant 0 : index
    %c0_22 = arith.constant 0 : index
    %28 = vector.load %arg9[%27, %c0_21, %c0_22] : memref<8x8x128xf32, #tpu.memory_space<vmem>>, vector<1x8x128xf32>
    %29 = vector.shape_cast %28 : vector<1x8x128xf32> to vector<8x128xf32>
    %30 = arith.addf %26, %29 : vector<8x128xf32>
    %31 = math.tanh %30 : vector<8x128xf32>
    %32 = arith.index_cast %c1_i32 : i32 to index
    %c0_23 = arith.constant 0 : index
    %c0_24 = arith.constant 0 : index
    %33 = vector.load %arg9[%32, %c0_23, %c0_24] : memref<8x8x128xf32, #tpu.memory_space<vmem>>, vector<1x8x128xf32>
    %34 = vector.shape_cast %33 : vector<1x8x128xf32> to vector<8x128xf32>
    %35 = vector.shape_cast %31 : vector<8x128xf32> to vector<1x8x128xf32>
    tpu.vector_store %arg9[%32, %c0_23, %c0_24], %35 {strides = array<i32>} : memref<8x8x128xf32, #tpu.memory_space<vmem>>, vector<1x8x128xf32>,
    %c2_i32 = arith.constant 2 : i32
    %36 = arith.truncf %31 : vector<8x128xf32> to vector<8x128xbf16>
    %cst_25 = arith.constant dense<0.000000e+00> : vector<8x128xf32>
    %37 = tpu.matmul %36, %12, %cst_25 {dimension_numbers = #tpu.dot_dimension_numbers<[1], [0], [0], [1], [0, 0, 1, 1], [], []>} : vector<8x128xbf16>, vector<128x128xbf16>, vector<8x128xf32> -> vector<8x128xf32>
    %38 = arith.index_cast %c2_i32 : i32 to index
    %c0_26 = arith.constant 0 : index
    %c0_27 = arith.constant 0 : index
    %39 = vector.load %arg9[%38, %c0_26, %c0_27] : memref<8x8x128xf32, #tpu.memory_space<vmem>>, vector<1x8x128xf32>
    %40 = vector.shape_cast %39 : vector<1x8x128xf32> to vector<8x128xf32>
    %41 = arith.addf %37, %40 : vector<8x128xf32>
    %42 = math.tanh %41 : vector<8x128xf32>
    %43 = arith.index_cast %c2_i32 : i32 to index
    %c0_28 = arith.constant 0 : index
    %c0_29 = arith.constant 0 : index
    %44 = vector.load %arg9[%43, %c0_28, %c0_29] : memref<8x8x128xf32, #tpu.memory_space<vmem>>, vector<1x8x128xf32>
    %45 = vector.shape_cast %44 : vector<1x8x128xf32> to vector<8x128xf32>
    %46 = vector.shape_cast %42 : vector<8x128xf32> to vector<1x8x128xf32>
    tpu.vector_store %arg9[%43, %c0_28, %c0_29], %46 {strides = array<i32>} : memref<8x8x128xf32, #tpu.memory_space<vmem>>, vector<1x8x128xf32>,
    %c3_i32 = arith.constant 3 : i32
    %47 = arith.truncf %42 : vector<8x128xf32> to vector<8x128xbf16>
    %cst_30 = arith.constant dense<0.000000e+00> : vector<8x128xf32>
    %48 = tpu.matmul %47, %12, %cst_30 {dimension_numbers = #tpu.dot_dimension_numbers<[1], [0], [0], [1], [0, 0, 1, 1], [], []>} : vector<8x128xbf16>, vector<128x128xbf16>, vector<8x128xf32> -> vector<8x128xf32>
    %49 = arith.index_cast %c3_i32 : i32 to index
    %c0_31 = arith.constant 0 : index
    %c0_32 = arith.constant 0 : index
    %50 = vector.load %arg9[%49, %c0_31, %c0_32] : memref<8x8x128xf32, #tpu.memory_space<vmem>>, vector<1x8x128xf32>
    %51 = vector.shape_cast %50 : vector<1x8x128xf32> to vector<8x128xf32>
    %52 = arith.addf %48, %51 : vector<8x128xf32>
    %53 = math.tanh %52 : vector<8x128xf32>
    %54 = arith.index_cast %c3_i32 : i32 to index
    %c0_33 = arith.constant 0 : index
    %c0_34 = arith.constant 0 : index
    %55 = vector.load %arg9[%54, %c0_33, %c0_34] : memref<8x8x128xf32, #tpu.memory_space<vmem>>, vector<1x8x128xf32>
    %56 = vector.shape_cast %55 : vector<1x8x128xf32> to vector<8x128xf32>
    %57 = vector.shape_cast %53 : vector<8x128xf32> to vector<1x8x128xf32>
    tpu.vector_store %arg9[%54, %c0_33, %c0_34], %57 {strides = array<i32>} : memref<8x8x128xf32, #tpu.memory_space<vmem>>, vector<1x8x128xf32>,
    %c4_i32 = arith.constant 4 : i32
    %58 = arith.truncf %53 : vector<8x128xf32> to vector<8x128xbf16>
    %cst_35 = arith.constant dense<0.000000e+00> : vector<8x128xf32>
    %59 = tpu.matmul %58, %12, %cst_35 {dimension_numbers = #tpu.dot_dimension_numbers<[1], [0], [0], [1], [0, 0, 1, 1], [], []>} : vector<8x128xbf16>, vector<128x128xbf16>, vector<8x128xf32> -> vector<8x128xf32>
    %60 = arith.index_cast %c4_i32 : i32 to index
    %c0_36 = arith.constant 0 : index
    %c0_37 = arith.constant 0 : index
    %61 = vector.load %arg9[%60, %c0_36, %c0_37] : memref<8x8x128xf32, #tpu.memory_space<vmem>>, vector<1x8x128xf32>
    %62 = vector.shape_cast %61 : vector<1x8x128xf32> to vector<8x128xf32>
    %63 = arith.addf %59, %62 : vector<8x128xf32>
    %64 = math.tanh %63 : vector<8x128xf32>
    %65 = arith.index_cast %c4_i32 : i32 to index
    %c0_38 = arith.constant 0 : index
    %c0_39 = arith.constant 0 : index
    %66 = vector.load %arg9[%65, %c0_38, %c0_39] : memref<8x8x128xf32, #tpu.memory_space<vmem>>, vector<1x8x128xf32>
    %67 = vector.shape_cast %66 : vector<1x8x128xf32> to vector<8x128xf32>
    %68 = vector.shape_cast %64 : vector<8x128xf32> to vector<1x8x128xf32>
    tpu.vector_store %arg9[%65, %c0_38, %c0_39], %68 {strides = array<i32>} : memref<8x8x128xf32, #tpu.memory_space<vmem>>, vector<1x8x128xf32>,
    %c5_i32 = arith.constant 5 : i32
    %69 = arith.truncf %64 : vector<8x128xf32> to vector<8x128xbf16>
    %cst_40 = arith.constant dense<0.000000e+00> : vector<8x128xf32>
    %70 = tpu.matmul %69, %12, %cst_40 {dimension_numbers = #tpu.dot_dimension_numbers<[1], [0], [0], [1], [0, 0, 1, 1], [], []>} : vector<8x128xbf16>, vector<128x128xbf16>, vector<8x128xf32> -> vector<8x128xf32>
    %71 = arith.index_cast %c5_i32 : i32 to index
    %c0_41 = arith.constant 0 : index
    %c0_42 = arith.constant 0 : index
    %72 = vector.load %arg9[%71, %c0_41, %c0_42] : memref<8x8x128xf32, #tpu.memory_space<vmem>>, vector<1x8x128xf32>
    %73 = vector.shape_cast %72 : vector<1x8x128xf32> to vector<8x128xf32>
    %74 = arith.addf %70, %73 : vector<8x128xf32>
    %75 = math.tanh %74 : vector<8x128xf32>
    %76 = arith.index_cast %c5_i32 : i32 to index
    %c0_43 = arith.constant 0 : index
    %c0_44 = arith.constant 0 : index
    %77 = vector.load %arg9[%76, %c0_43, %c0_44] : memref<8x8x128xf32, #tpu.memory_space<vmem>>, vector<1x8x128xf32>
    %78 = vector.shape_cast %77 : vector<1x8x128xf32> to vector<8x128xf32>
    %79 = vector.shape_cast %75 : vector<8x128xf32> to vector<1x8x128xf32>
    tpu.vector_store %arg9[%76, %c0_43, %c0_44], %79 {strides = array<i32>} : memref<8x8x128xf32, #tpu.memory_space<vmem>>, vector<1x8x128xf32>,
    %c6_i32 = arith.constant 6 : i32
    %80 = arith.truncf %75 : vector<8x128xf32> to vector<8x128xbf16>
    %cst_45 = arith.constant dense<0.000000e+00> : vector<8x128xf32>
    %81 = tpu.matmul %80, %12, %cst_45 {dimension_numbers = #tpu.dot_dimension_numbers<[1], [0], [0], [1], [0, 0, 1, 1], [], []>} : vector<8x128xbf16>, vector<128x128xbf16>, vector<8x128xf32> -> vector<8x128xf32>
    %82 = arith.index_cast %c6_i32 : i32 to index
    %c0_46 = arith.constant 0 : index
    %c0_47 = arith.constant 0 : index
    %83 = vector.load %arg9[%82, %c0_46, %c0_47] : memref<8x8x128xf32, #tpu.memory_space<vmem>>, vector<1x8x128xf32>
    %84 = vector.shape_cast %83 : vector<1x8x128xf32> to vector<8x128xf32>
    %85 = arith.addf %81, %84 : vector<8x128xf32>
    %86 = math.tanh %85 : vector<8x128xf32>
    %87 = arith.index_cast %c6_i32 : i32 to index
    %c0_48 = arith.constant 0 : index
    %c0_49 = arith.constant 0 : index
    %88 = vector.load %arg9[%87, %c0_48, %c0_49] : memref<8x8x128xf32, #tpu.memory_space<vmem>>, vector<1x8x128xf32>
    %89 = vector.shape_cast %88 : vector<1x8x128xf32> to vector<8x128xf32>
    %90 = vector.shape_cast %86 : vector<8x128xf32> to vector<1x8x128xf32>
    tpu.vector_store %arg9[%87, %c0_48, %c0_49], %90 {strides = array<i32>} : memref<8x8x128xf32, #tpu.memory_space<vmem>>, vector<1x8x128xf32>,
    %c7_i32 = arith.constant 7 : i32
    %91 = arith.truncf %86 : vector<8x128xf32> to vector<8x128xbf16>
    %cst_50 = arith.constant dense<0.000000e+00> : vector<8x128xf32>
    %92 = tpu.matmul %91, %12, %cst_50 {dimension_numbers = #tpu.dot_dimension_numbers<[1], [0], [0], [1], [0, 0, 1, 1], [], []>} : vector<8x128xbf16>, vector<128x128xbf16>, vector<8x128xf32> -> vector<8x128xf32>
    %93 = arith.index_cast %c7_i32 : i32 to index
    %c0_51 = arith.constant 0 : index
    %c0_52 = arith.constant 0 : index
    %94 = vector.load %arg9[%93, %c0_51, %c0_52] : memref<8x8x128xf32, #tpu.memory_space<vmem>>, vector<1x8x128xf32>
    %95 = vector.shape_cast %94 : vector<1x8x128xf32> to vector<8x128xf32>
    %96 = arith.addf %92, %95 : vector<8x128xf32>
    %97 = math.tanh %96 : vector<8x128xf32>
    %98 = arith.index_cast %c7_i32 : i32 to index
    %c0_53 = arith.constant 0 : index
    %c0_54 = arith.constant 0 : index
    %99 = vector.load %arg9[%98, %c0_53, %c0_54] : memref<8x8x128xf32, #tpu.memory_space<vmem>>, vector<1x8x128xf32>
    %100 = vector.shape_cast %99 : vector<1x8x128xf32> to vector<8x128xf32>
    %101 = vector.shape_cast %97 : vector<8x128xf32> to vector<1x8x128xf32>
    tpu.vector_store %arg9[%98, %c0_53, %c0_54], %101 {strides = array<i32>} : memref<8x8x128xf32, #tpu.memory_space<vmem>>, vector<1x8x128xf32>,
    %c8_i32 = arith.constant 8 : i32
    %c0_55 = arith.constant 0 : index
    %c0_56 = arith.constant 0 : index
    %102 = vector.load %arg8[%c0_55, %c0_56] : memref<8x128xf32, #tpu.memory_space<vmem>>, vector<8x128xf32>
    tpu.vector_store %arg8[%c0_55, %c0_56], %97 {strides = array<i32>} : memref<8x128xf32, #tpu.memory_space<vmem>>, vector<8x128xf32>,
    %c0_57 = arith.constant 0 : index
    %c0_58 = arith.constant 0 : index
    %c0_59 = arith.constant 0 : index
    %103 = vector.load %arg9[%c0_57, %c0_58, %c0_59] : memref<8x8x128xf32, #tpu.memory_space<vmem>>, vector<8x8x128xf32>
    %104 = vector.shape_cast %103 : vector<8x8x128xf32> to vector<64x128xf32>
    %105 = arith.truncf %104 : vector<64x128xf32> to vector<64x128xbf16>
    %c0_60 = arith.constant 0 : index
    %c0_61 = arith.constant 0 : index
    %106 = vector.load %arg5[%c0_60, %c0_61] : memref<128x128xbf16, #tpu.memory_space<vmem>>, vector<128x128xbf16>
    %cst_62 = arith.constant dense<0.000000e+00> : vector<64x128xf32>
    %107 = tpu.matmul %105, %106, %cst_62 {dimension_numbers = #tpu.dot_dimension_numbers<[1], [0], [0], [1], [0, 0, 1, 1], [], []>} : vector<64x128xbf16>, vector<128x128xbf16>, vector<64x128xf32> -> vector<64x128xf32>
    %c0_63 = arith.constant 0 : index
    %c0_64 = arith.constant 0 : index
    %108 = vector.load %arg6[%c0_63, %c0_64] : memref<1x128xf32, #tpu.memory_space<vmem>>, vector<1x128xf32>
    %109 = vector.broadcast %108 : vector<1x128xf32> to vector<64x128xf32>
    %110 = arith.addf %107, %109 : vector<64x128xf32>
    %111 = vector.shape_cast %110 : vector<64x128xf32> to vector<8x8x128xf32>
    %c0_65 = arith.constant 0 : index
    %c0_66 = arith.constant 0 : index
    %c0_67 = arith.constant 0 : index
    %112 = vector.load %arg7[%c0_65, %c0_66, %c0_67] : memref<8x8x128xf32, #tpu.memory_space<vmem>>, vector<8x8x128xf32>
    tpu.vector_store %arg7[%c0_65, %c0_66, %c0_67], %111 {strides = array<i32>} : memref<8x8x128xf32, #tpu.memory_space<vmem>>, vector<8x8x128xf32>,
    return
  }
  func.func @transform_0(%arg0: i32) -> (i32, i32, i32) {
    %c0_i32 = arith.constant 0 : i32
    %c0_i32_0 = arith.constant 0 : i32
    %c0_i32_1 = arith.constant 0 : i32
    return %arg0, %c0_i32, %c0_i32_0 : i32, i32, i32
  }
  func.func @transform_1(%arg0: i32) -> (i32, i32) {
    %c0_i32 = arith.constant 0 : i32
    %c0_i32_0 = arith.constant 0 : i32
    %c0_i32_1 = arith.constant 0 : i32
    return %c0_i32, %c0_i32_0 : i32, i32
  }
  func.func @transform_2(%arg0: i32) -> (i32, i32) {
    %c0_i32 = arith.constant 0 : i32
    %c0_i32_0 = arith.constant 0 : i32
    %c0_i32_1 = arith.constant 0 : i32
    return %c0_i32, %c0_i32_0 : i32, i32
  }
  func.func @transform_3(%arg0: i32) -> (i32, i32) {
    %c0_i32 = arith.constant 0 : i32
    %c0_i32_0 = arith.constant 0 : i32
    %c0_i32_1 = arith.constant 0 : i32
    return %c0_i32, %c0_i32_0 : i32, i32
  }
  func.func @transform_4(%arg0: i32) -> (i32, i32) {
    %c0_i32 = arith.constant 0 : i32
    %c0_i32_0 = arith.constant 0 : i32
    %c0_i32_1 = arith.constant 0 : i32
    return %c0_i32, %c0_i32_0 : i32, i32
  }
  func.func @transform_5(%arg0: i32) -> (i32, i32) {
    %c0_i32 = arith.constant 0 : i32
    %c0_i32_0 = arith.constant 0 : i32
    %c0_i32_1 = arith.constant 0 : i32
    return %c0_i32, %c0_i32_0 : i32, i32
  }
  func.func @transform_6(%arg0: i32) -> (i32, i32, i32) {
    %c0_i32 = arith.constant 0 : i32
    %c0_i32_0 = arith.constant 0 : i32
    %c0_i32_1 = arith.constant 0 : i32
    return %arg0, %c0_i32, %c0_i32_0 : i32, i32, i32
  }
}

</mosaic_0001>

<bundles_post_ra>
// kernel: tpu_custom_call.1
= control target key start
LH: loop header
LB: loop body
LE: loop exit
PB: predicated region body
PF: predicated region fallthrough
CT: control target
= control target key end

     0   :  { %11 = vsyncpa [#allocation5], 0  ;;  %s1641_s0 = inlined_call_operand.hbm [shape: bf16[8,8,128], index: 0, kind: input, shape index: {}]   ;;  %s1642_s1 = inlined_call_operand.hbm [shape: bf16[128,128], index: 1, kind: input, shape index: {}]   ;;  %s1643_s2 = inlined_call_operand.hbm [shape: bf16[128,128], index: 2, kind: input, shape index: {}]   ;;  %s1644_s3 = inlined_call_operand.vmem [shape: f32[1,128], index: 3, kind: input, shape index: {}]   ;;  %s1645_s4 = inlined_call_operand.hbm [shape: bf16[128,128], index: 4, kind: input, shape index: {}]   ;;  %s1646_s5 = inlined_call_operand.vmem [shape: f32[1,128], index: 5, kind: input, shape index: {}]   ;;  %s1647_s6 = inlined_call_operand.hbm [shape: f32[8,8,128], index: 6, kind: output, shape index: {}]  }
   0x1   :  { %12 = vsyncpa [#allocation8], 0 }
   0x2   :  { %13 = vsyncpa [#allocation11], 0 }
   0x3   :  { %14 = vsyncpa [#allocation6], 0  ;;  %s1359_s21 = smov [#allocation7]   ;;  %s1360_s23 = smov [#allocation4]  }
   0x4   :  { %s32_s22 = sshll.u32 %s1359_s21, 4  ;;  %s20_s24 = sshll.u32 %s1360_s23, 4  ;;  %s33_s22 = int_to_ptr.vmem [resolvable:$true] %s32_s22  ;;  %s21_s24 = int_to_ptr.vmem [resolvable:$true] %s20_s24 }
   0x5   :  { %s1259_s25 = scalar_lea.vmem %s33_s22, 1024  ;;  %p1264_p1 = scmp.lt.s32.totalorder %s33_s22, %s33_s22 }
   0x6   :  { %p1260_p0 = scmp.ne.s32.totalorder %s33_s22, %s1259_s25  ;;  %p1265_p2 = scmp.lt.s32.totalorder %s1259_s25, %s1259_s25 }
   0x8   :  { %p1266_p3 = por %p1265_p2, %p1264_p1 }
   0xa   :  { %p1267_p4 = pnand %p1266_p3, %p1260_p0 }
   0xc   :  { %1270 = shalt.err (!%p1267_p4)
}
   0xd   :  { %s1361_s26 = smov 64   ;;  %s1362_s27 = smov 4  }
   0xe   :  { %38 = dma.hbm_to_vmem [thread:$0]  %s1642_s1, 1024, %s33_s22, [#allocation8], %s1361_s26, %s1361_s26, %s1362_s27  }
   0xf   :  { %s1279_s30 = scalar_lea.vmem %s21_s24, 512  ;;  %p1284_p6 = scmp.lt.s32.totalorder %s21_s24, %s21_s24 }
  0x10   :  { %p1280_p5 = scmp.ne.s32.totalorder %s21_s24, %s1279_s30  ;;  %p1285_p7 = scmp.lt.s32.totalorder %s1279_s30, %s1279_s30 }
  0x12   :  { %p1286_p8 = por %p1285_p7, %p1284_p6 }
  0x14   :  { %p1287_p9 = pnand %p1286_p8, %p1280_p5 }
  0x16   :  { %1290 = shalt.err (!%p1287_p9)
}
  0x17   :  { %26 = dma.hbm_to_vmem [thread:$0]  %s1641_s0, 512, %s21_s24, [#allocation5], %s1361_s26, %s1361_s26, %s1362_s27  }
  0x18   :  { %s1363_s9 = smov [#allocation9]   ;;  %s1364_s11 = smov [#allocation10]  }
  0x19   :  { %s44_s10 = sshll.u32 %s1363_s9, 4  ;;  %s58_s12 = sshll.u32 %s1364_s11, 4  ;;  %s45_s10 = int_to_ptr.vmem [resolvable:$true] %s44_s10  ;;  %s59_s12 = int_to_ptr.vmem [resolvable:$true] %s58_s12 }
  0x1a   :  { %s1299_s1 = scalar_lea.vmem %s45_s10, 1024  ;;  %p1304_p11 = scmp.lt.s32.totalorder %s45_s10, %s45_s10 }
  0x1b   :  { %p1300_p10 = scmp.ne.s32.totalorder %s45_s10, %s1299_s1  ;;  %p1305_p12 = scmp.lt.s32.totalorder %s1299_s1, %s1299_s1 }
  0x1d   :  { %p1306_p13 = por %p1305_p12, %p1304_p11 }
  0x1f   :  { %p1307_p0 = pnand %p1306_p13, %p1300_p10 }
  0x21   :  { %1310 = shalt.err (!%p1307_p0)
}
  0x22   :  { %50 = dma.hbm_to_vmem [thread:$0]  %s1643_s2, 1024, %s45_s10, [#allocation8], %s1361_s26, %s1361_s26, %s1362_s27  }
  0x23   :  { %s1319_s0 = scalar_lea.vmem %s59_s12, 1024  ;;  %p1324_p2 = scmp.lt.s32.totalorder %s59_s12, %s59_s12 }
  0x24   :  { %p1320_p1 = scmp.ne.s32.totalorder %s59_s12, %s1319_s0  ;;  %p1325_p3 = scmp.lt.s32.totalorder %s1319_s0, %s1319_s0 }
  0x26   :  { %p1326_p4 = por %p1325_p3, %p1324_p2 }
  0x28   :  { %p1327_p5 = pnand %p1326_p4, %p1320_p1 }
  0x2a   :  { %1330 = shalt.err (!%p1327_p5)
}
  0x2b   :  { %64 = dma.hbm_to_vmem [thread:$0]  %s1645_s4, 1024, %s59_s12, [#allocation11], %s1361_s26, %s1361_s26, %s1362_s27  }
  0x2c   :  { %1351 = dma.done.wait [#allocation5], 512  }
  0x2d   :  { %1352 = vsyncadd [#allocation5], 4294966784 }
  0x2e   :  { %1353 = dma.done.wait [#allocation8], 2048  }
  0x2f   :  { %1354 = vsyncadd [#allocation8], 4294965248 }
  0x30   :  { %1355 = dma.done.wait [#allocation11], 1024  }
  0x31   :  { %1356 = vsyncadd [#allocation11], 4294966272  ;;  %v1365_v0 = vmov 0.0   ;;  %vm1366_vm0 = vmmov 0   ;;  %v1207_v1 = vld [vmem:[#allocation7 + $0x38] sm:$0xff]   ;;  %v1209_v3 = vld [vmem:[#allocation7 + $0x30] sm:$0xff]  }
  0x32   :  { %1011 = vmatprep.subr.bf16.mxu1 %v1365_v0  ;;  %1027 = vmatprep.mubr.msk.bf16.mxu1 %vm1366_vm0, %v1365_v0  ;;  %v1433_v2 = vld [vmem:[#allocation9 + $0x38] sm:$0xff]   ;;  %v1436_v4 = vld [vmem:[#allocation9 + $0x30] sm:$0xff]   ;;  %v1211_v5 = vld [vmem:[#allocation7 + $0x28] sm:$0xff]   ;;  %v1367_v19 = vmov 0.0|0.0  }
  0x33   :  { %987 = vmatprep.subr.bf16.mxu0 %v1207_v1  ;;  %1012 = vmatpush3.bf16.msra.mxu1 %v1433_v2  ;;  %v1440_v6 = vld [vmem:[#allocation9 + $0x28] sm:$0xff]   ;;  %v1213_v7 = vld [vmem:[#allocation7 + $0x20] sm:$0xff]   ;;  %v1215_v9 = vld [vmem:[#allocation7 + $0x18] sm:$0xff]  }
  0x34   :  { %988 = vmatpush3.bf16.msra.mxu0 %v1207_v1  ;;  %1013 = vmatprep.subr.bf16.mxu1 %v1365_v0  ;;  %v1444_v8 = vld [vmem:[#allocation9 + $0x20] sm:$0xff]   ;;  %v1447_v10 = vld [vmem:[#allocation9 + $0x18] sm:$0xff]   ;;  %v1217_v11 = vld [vmem:[#allocation7 + $0x10] sm:$0xff]  }
  0x35   :  { %989 = vmatprep.subr.bf16.mxu0 %v1209_v3  ;;  %v1223_v12 = vld [vmem:[#allocation4] sm:$0xff]   ;;  %v1451_v13 = vld [vmem:[#allocation9 + $0x10] sm:$0xff]   ;;  %v1219_v14 = vld [vmem:[#allocation7 + $0x8] sm:$0xff]  }
  0x36   :  { %1003 = vmatprep.mubr.bf16.mxu0 %v1223_v12  ;;  %v1455_v15 = vld [vmem:[#allocation9 + $0x8] sm:$0xff]   ;;  %v1221_v16 = vld [vmem:[#allocation7] sm:$0xff]   ;;  %v1225_v20 = vld [vmem:[#allocation4 + $0x10] sm:$0xff]  }
  0x37   :  { %1014 = vmatpush3.bf16.msra.mxu1 %v1436_v4  ;;  %v1460_v17 = vld [vmem:[#allocation9] sm:$0xff]   ;;  %v1224_v18 = vld [vmem:[#allocation4 + $0x8] sm:$0xff]   ;;  %v1226_v21 = vld [vmem:[#allocation4 + $0x18] sm:$0xff]  }
  0x38   :  { %990 = vmatpush3.bf16.msra.mxu0 %v1209_v3  ;;  %1015 = vmatprep.subr.bf16.mxu1 %v1365_v0  ;;  %v1505_v24 = vld [vmem:[%s1644_s3] ss:$0 sm:$0xff] }
  0x39   :  { %991 = vmatprep.subr.bf16.mxu0 %v1211_v5 }
  0x3b   :  { %1016 = vmatpush3.bf16.msra.mxu1 %v1440_v6 }
  0x3c   :  { %992 = vmatpush3.bf16.msra.mxu0 %v1211_v5  ;;  %1017 = vmatprep.subr.bf16.mxu1 %v1365_v0 }
  0x3d   :  { %993 = vmatprep.subr.bf16.mxu0 %v1213_v7 }
  0x3f   :  { %1018 = vmatpush3.bf16.msra.mxu1 %v1444_v8 }
  0x40   :  { %994 = vmatpush3.bf16.msra.mxu0 %v1213_v7  ;;  %1019 = vmatprep.subr.bf16.mxu1 %v1365_v0 }
  0x41   :  { %995 = vmatprep.subr.bf16.mxu0 %v1215_v9 }
  0x43   :  { %1020 = vmatpush3.bf16.msra.mxu1 %v1447_v10 }
  0x44   :  { %996 = vmatpush3.bf16.msra.mxu0 %v1215_v9  ;;  %1021 = vmatprep.subr.bf16.mxu1 %v1365_v0 }
  0x45   :  { %997 = vmatprep.subr.bf16.mxu0 %v1217_v11 }
  0x47   :  { %1022 = vmatpush3.bf16.msra.mxu1 %v1451_v13 }
  0x48   :  { %998 = vmatpush3.bf16.msra.mxu0 %v1217_v11  ;;  %1023 = vmatprep.subr.bf16.mxu1 %v1365_v0 }
  0x49   :  { %999 = vmatprep.subr.bf16.mxu0 %v1219_v14 }
  0x4b   :  { %1024 = vmatpush3.bf16.msra.mxu1 %v1455_v15 }
  0x4c   :  { %1000 = vmatpush3.bf16.msra.mxu0 %v1219_v14  ;;  %1025 = vmatprep.subr.bf16.mxu1 %v1365_v0 }
  0x4d   :  { %1001 = vmatprep.subr.bf16.mxu0 %v1221_v16 }
  0x4f   :  { %1026 = vmatpush3.bf16.msra.mxu1 %v1460_v17 }
  0x50   :  { %1002 = vmatpush3.bf16.msra.mxu0 %v1221_v16  ;;  %1051 = vmatprep.subr.bf16.mxu1 %v1365_v0 }
  0x51   :  { %1031 = vmatprep.subr.bf16.mxu0 %v1365_v0 }
  0x52   :  { %1028 = vmatmul.mubr.bf16.vlgmr.msra.gmra.mxu1 %v1367_v19  ;;  %v1228_v19 = vld [vmem:[#allocation10 + $0x30] sm:$0xff]  }
  0x53   :  { %1004 = vmatmul.mubr.bf16.vlgmr.msra.gmra.mxu0 %v1224_v18  ;;  %1052 = vmatpush3.bf16.msra.mxu1 %v1433_v2 }
  0x54   :  { %1032 = vmatpush3.bf16.msra.mxu0 %v1433_v2  ;;  %1053 = vmatprep.subr.bf16.mxu1 %v1365_v0 }
  0x55   :  { %1033 = vmatprep.subr.bf16.mxu0 %v1365_v0  ;;  %1067 = vmatprep.mubr.msk.bf16.mxu1 %vm1366_vm0, %v1365_v0 }
  0x56   :  { %1007 = vmatprep.mubr.bf16.mxu0 %v1225_v20  ;;  %v1231_v20 = vld [vmem:[#allocation10 + $0x18] sm:$0xff]  }
  0x57   :  { %1054 = vmatpush3.bf16.msra.mxu1 %v1436_v4 }
  0x58   :  { %1034 = vmatpush3.bf16.msra.mxu0 %v1436_v4  ;;  %1055 = vmatprep.subr.bf16.mxu1 %v1365_v0 }
  0x59   :  { %1035 = vmatprep.subr.bf16.mxu0 %v1365_v0 }
  0x5b   :  { %1056 = vmatpush3.bf16.msra.mxu1 %v1440_v6  ;;  %1008 = vmatmul.mubr.bf16.gmra.mxu0 %v1226_v21  ;;  %v1232_v21 = vld [vmem:[#allocation10 + $0x10] sm:$0xff]  }
  0x5c   :  { %1036 = vmatpush3.bf16.msra.mxu0 %v1440_v6  ;;  %1057 = vmatprep.subr.bf16.mxu1 %v1365_v0 }
  0x5d   :  { %1037 = vmatprep.subr.bf16.mxu0 %v1365_v0  ;;  %1047 = vmatprep.mubr.msk.bf16.mxu0 %vm1366_vm0, %v1365_v0 }
  0x5f   :  { %1058 = vmatpush3.bf16.msra.mxu1 %v1444_v8 }
  0x60   :  { %1038 = vmatpush3.bf16.msra.mxu0 %v1444_v8  ;;  %1059 = vmatprep.subr.bf16.mxu1 %v1365_v0 }
  0x61   :  { %1039 = vmatprep.subr.bf16.mxu0 %v1365_v0 }
  0x63   :  { %1060 = vmatpush3.bf16.msra.mxu1 %v1447_v10 }
  0x64   :  { %1040 = vmatpush3.bf16.msra.mxu0 %v1447_v10  ;;  %1061 = vmatprep.subr.bf16.mxu1 %v1365_v0 }
  0x65   :  { %1041 = vmatprep.subr.bf16.mxu0 %v1365_v0 }
  0x67   :  { %1062 = vmatpush3.bf16.msra.mxu1 %v1451_v13 }
  0x68   :  { %1042 = vmatpush3.bf16.msra.mxu0 %v1451_v13  ;;  %1063 = vmatprep.subr.bf16.mxu1 %v1365_v0 }
  0x69   :  { %1043 = vmatprep.subr.bf16.mxu0 %v1365_v0 }
  0x6b   :  { %1064 = vmatpush3.bf16.msra.mxu1 %v1455_v15 }
  0x6c   :  { %1044 = vmatpush3.bf16.msra.mxu0 %v1455_v15  ;;  %1065 = vmatprep.subr.bf16.mxu1 %v1365_v0 }
  0x6d   :  { %1045 = vmatprep.subr.bf16.mxu0 %v1365_v0 }
  0x6f   :  { %1066 = vmatpush3.bf16.msra.mxu1 %v1460_v17 }
  0x70   :  { %1046 = vmatpush3.bf16.msra.mxu0 %v1460_v17  ;;  %1091 = vmatprep.subr.bf16.mxu1 %v1365_v0 }
  0x71   :  { %1071 = vmatprep.subr.bf16.mxu0 %v1365_v0 }
 0x112   :  { %v362_v22 = vpop.f32.mrf.mxu1 }
 0x113   :  { %v1005_v23 = vpop.f32.mrf.mxu0 }
 0x114   :  { %v1029_v25 = vpop.f32.mrf.mxu1  ;;  %v231_v47 = vadd.f32 %v1005_v23, %v1505_v24  ;;  %v1234_v23 = vld [vmem:[#allocation10] sm:$0xff]  }
 0x115   :  { %v222_v26 = vpop.f32.mrf.mxu0 }
 0x116   :  { %v223_v27 = vadd.f32 %v1505_v24, %v222_v26  ;;  %v365_v28 = vpop.f32.mrf.mxu1 }
 0x117   :  { %v1006_v33 = vpop.f32.mrf.mxu0 }
 0x118   :  { %v363_v29 = vadd.f32 %v362_v22, %v223_v27  ;;  %v1030_v30 = vpop.f32.mrf.mxu1  ;;  %v234_v55 = vadd.f32 %v1006_v33, %v1505_v24  ;;  %v1233_v22 = vld [vmem:[#allocation10 + $0x8] sm:$0xff]  }
 0x119   :  { %v225_v34 = vpop.f32.mrf.mxu0 }
 0x11a   :  { %1235 = vtanh.f32 %v363_v29  ;;  %v226_v39 = vadd.f32 %v1505_v24, %v225_v34 }
 0x11b   :  { %v1530_v35 = vpop.f32.mrf.mxu0 }
 0x11c   :  { %v247_v27 = vadd.f32 %v1530_v35, %v1505_v24 }
 0x11d   :  { %v1532_v36 = vpop.f32.mrf.mxu0 }
 0x11e   :  { %v239_v63 = vadd.f32 %v1505_v24, %v1532_v36  ;;  %v882_v36 = vld [vmem:[%s1646_s5] ss:$0 sm:$0xff]  ;;  %s1368_s5 = smov [#allocation12]  }
 0x11f   :  { %v1534_v37 = vpop.f32.mrf.mxu0  ;;  %s847_s18 = sshll.u32 %s1368_s5, 4  ;;  %s848_s18 = int_to_ptr.vmem [resolvable:$true] %s847_s18 }
 0x120   :  { %s1331_s19 = scalar_lea.vmem %s848_s18, 1024  ;;  %p1336_p7 = scmp.lt.s32.totalorder %s848_s18, %s848_s18 }
 0x121   :  { %v1536_v38 = vpop.f32.mrf.mxu0  ;;  %p1332_p6 = scmp.ne.s32.totalorder %s848_s18, %s1331_s19  ;;  %p1337_p8 = scmp.lt.s32.totalorder %s1331_s19, %s1331_s19 }
 0x123   :  { %p1338_p9 = por %p1337_p8, %p1336_p7 }
 0x125   :  { %p1339_p10 = pnand %p1338_p9, %p1332_p6 }
 0x127   :  { %v1508_v31 = vpop.eup %1235 }
 0x128   :  { %v370_v32 = vpack.c.bf16 %v1508_v31, %v1508_v31 }
 0x12a   :  { %1048 = vmatmul.mubr.bf16.vlgmr.msra.gmra.mxu0 %v370_v32 }
 0x12b   :  { %1072 = vmatpush3.bf16.msra.mxu0 %v1433_v2  ;;  %1087 = vmatprep.mubr.msk.bf16.mxu0 %vm1366_vm0, %v1365_v0 }
 0x12c   :  { %1073 = vmatprep.subr.bf16.mxu0 %v1365_v0 }
 0x12f   :  { %1074 = vmatpush3.bf16.msra.mxu0 %v1436_v4 }
 0x130   :  { %1075 = vmatprep.subr.bf16.mxu0 %v1365_v0 }
 0x133   :  { %1076 = vmatpush3.bf16.msra.mxu0 %v1440_v6 }
 0x134   :  { %1077 = vmatprep.subr.bf16.mxu0 %v1365_v0 }
 0x137   :  { %1078 = vmatpush3.bf16.msra.mxu0 %v1444_v8 }
 0x138   :  { %1079 = vmatprep.subr.bf16.mxu0 %v1365_v0 }
 0x13b   :  { %1080 = vmatpush3.bf16.msra.mxu0 %v1447_v10 }
 0x13c   :  { %1081 = vmatprep.subr.bf16.mxu0 %v1365_v0 }
 0x13f   :  { %1082 = vmatpush3.bf16.msra.mxu0 %v1451_v13 }
 0x140   :  { %1083 = vmatprep.subr.bf16.mxu0 %v1365_v0 }
 0x143   :  { %1084 = vmatpush3.bf16.msra.mxu0 %v1455_v15 }
 0x144   :  { %1085 = vmatprep.subr.bf16.mxu0 %v1365_v0 }
 0x147   :  { %1086 = vmatpush3.bf16.msra.mxu0 %v1460_v17 }
 0x148   :  { %1111 = vmatprep.subr.bf16.mxu0 %v1365_v0 }
 0x1ea   :  { %v407_v40 = vpop.f32.mrf.mxu0 }
 0x1eb   :  { %v408_v41 = vadd.f32 %v407_v40, %v226_v39 }
 0x1ec   :  { %v1049_v42 = vpop.f32.mrf.mxu0 }
 0x1ed   :  { %1237 = vtanh.f32 %v408_v41 }
 0x1ee   :  { %v410_v43 = vpop.f32.mrf.mxu0 }
 0x1f0   :  { %v1050_v44 = vpop.f32.mrf.mxu0 }
 0x1fa   :  { %v1539_v45 = vpop.eup %1237 }
 0x1fb   :  { %v415_v46 = vpack.c.bf16 %v1539_v45, %v1539_v45 }
 0x1fd   :  { %1068 = vmatmul.mubr.bf16.vlgmr.msra.gmra.mxu1 %v415_v46 }
 0x1fe   :  { %1092 = vmatpush3.bf16.msra.mxu1 %v1433_v2  ;;  %1107 = vmatprep.mubr.msk.bf16.mxu1 %vm1366_vm0, %v1365_v0 }
 0x1ff   :  { %1093 = vmatprep.subr.bf16.mxu1 %v1365_v0 }
 0x202   :  { %1094 = vmatpush3.bf16.msra.mxu1 %v1436_v4 }
 0x203   :  { %1095 = vmatprep.subr.bf16.mxu1 %v1365_v0 }
 0x206   :  { %1096 = vmatpush3.bf16.msra.mxu1 %v1440_v6 }
 0x207   :  { %1097 = vmatprep.subr.bf16.mxu1 %v1365_v0 }
 0x20a   :  { %1098 = vmatpush3.bf16.msra.mxu1 %v1444_v8 }
 0x20b   :  { %1099 = vmatprep.subr.bf16.mxu1 %v1365_v0 }
 0x20e   :  { %1100 = vmatpush3.bf16.msra.mxu1 %v1447_v10 }
 0x20f   :  { %1101 = vmatprep.subr.bf16.mxu1 %v1365_v0 }
 0x212   :  { %1102 = vmatpush3.bf16.msra.mxu1 %v1451_v13 }
 0x213   :  { %1103 = vmatprep.subr.bf16.mxu1 %v1365_v0 }
 0x216   :  { %1104 = vmatpush3.bf16.msra.mxu1 %v1455_v15 }
 0x217   :  { %1105 = vmatprep.subr.bf16.mxu1 %v1365_v0 }
 0x21a   :  { %1106 = vmatpush3.bf16.msra.mxu1 %v1460_v17 }
 0x21b   :  { %1131 = vmatprep.subr.bf16.mxu1 %v1365_v0 }
 0x2bd   :  { %v452_v48 = vpop.f32.mrf.mxu1 }
 0x2be   :  { %v453_v49 = vadd.f32 %v452_v48, %v231_v47 }
 0x2bf   :  { %v1069_v50 = vpop.f32.mrf.mxu1 }
 0x2c0   :  { %1239 = vtanh.f32 %v453_v49 }
 0x2c1   :  { %v455_v51 = vpop.f32.mrf.mxu1 }
 0x2c3   :  { %v1070_v52 = vpop.f32.mrf.mxu1 }
 0x2cd   :  { %v1562_v53 = vpop.eup %1239 }
 0x2ce   :  { %v460_v54 = vpack.c.bf16 %v1562_v53, %v1562_v53 }
 0x2d0   :  { %1088 = vmatmul.mubr.bf16.vlgmr.msra.gmra.mxu0 %v460_v54 }
 0x2d1   :  { %1112 = vmatpush3.bf16.msra.mxu0 %v1433_v2  ;;  %1127 = vmatprep.mubr.msk.bf16.mxu0 %vm1366_vm0, %v1365_v0 }
 0x2d2   :  { %1113 = vmatprep.subr.bf16.mxu0 %v1365_v0 }
 0x2d5   :  { %1114 = vmatpush3.bf16.msra.mxu0 %v1436_v4 }
 0x2d6   :  { %1115 = vmatprep.subr.bf16.mxu0 %v1365_v0 }
 0x2d9   :  { %1116 = vmatpush3.bf16.msra.mxu0 %v1440_v6 }
 0x2da   :  { %1117 = vmatprep.subr.bf16.mxu0 %v1365_v0 }
 0x2dd   :  { %1118 = vmatpush3.bf16.msra.mxu0 %v1444_v8 }
 0x2de   :  { %1119 = vmatprep.subr.bf16.mxu0 %v1365_v0 }
 0x2e1   :  { %1120 = vmatpush3.bf16.msra.mxu0 %v1447_v10 }
 0x2e2   :  { %1121 = vmatprep.subr.bf16.mxu0 %v1365_v0 }
 0x2e5   :  { %1122 = vmatpush3.bf16.msra.mxu0 %v1451_v13 }
 0x2e6   :  { %1123 = vmatprep.subr.bf16.mxu0 %v1365_v0 }
 0x2e9   :  { %1124 = vmatpush3.bf16.msra.mxu0 %v1455_v15 }
 0x2ea   :  { %1125 = vmatprep.subr.bf16.mxu0 %v1365_v0 }
 0x2ed   :  { %1126 = vmatpush3.bf16.msra.mxu0 %v1460_v17 }
 0x2ee   :  { %1151 = vmatprep.subr.bf16.mxu0 %v1365_v0 }
 0x390   :  { %v497_v56 = vpop.f32.mrf.mxu0 }
 0x391   :  { %v498_v57 = vadd.f32 %v497_v56, %v234_v55 }
 0x392   :  { %v1089_v58 = vpop.f32.mrf.mxu0 }
 0x393   :  { %1241 = vtanh.f32 %v498_v57 }
 0x394   :  { %v500_v59 = vpop.f32.mrf.mxu0 }
 0x396   :  { %v1090_v60 = vpop.f32.mrf.mxu0 }
 0x3a0   :  { %v1585_v61 = vpop.eup %1241 }
 0x3a1   :  { %v505_v62 = vpack.c.bf16 %v1585_v61, %v1585_v61  ;;  %v695_v25 = vpack.c.bf16 %v1585_v61, %v1562_v53 }
 0x3a3   :  { %1108 = vmatmul.mubr.bf16.vlgmr.msra.gmra.mxu1 %v505_v62 }
 0x3a4   :  { %1132 = vmatpush3.bf16.msra.mxu1 %v1433_v2  ;;  %1147 = vmatprep.mubr.msk.bf16.mxu1 %vm1366_vm0, %v1365_v0 }
 0x3a5   :  { %1133 = vmatprep.subr.bf16.mxu1 %v1365_v0 }
 0x3a8   :  { %1134 = vmatpush3.bf16.msra.mxu1 %v1436_v4 }
 0x3a9   :  { %1135 = vmatprep.subr.bf16.mxu1 %v1365_v0 }
 0x3ac   :  { %1136 = vmatpush3.bf16.msra.mxu1 %v1440_v6 }
 0x3ad   :  { %1137 = vmatprep.subr.bf16.mxu1 %v1365_v0 }
 0x3b0   :  { %1138 = vmatpush3.bf16.msra.mxu1 %v1444_v8 }
 0x3b1   :  { %1139 = vmatprep.subr.bf16.mxu1 %v1365_v0 }
 0x3b4   :  { %1140 = vmatpush3.bf16.msra.mxu1 %v1447_v10 }
 0x3b5   :  { %1141 = vmatprep.subr.bf16.mxu1 %v1365_v0 }
 0x3b8   :  { %1142 = vmatpush3.bf16.msra.mxu1 %v1451_v13 }
 0x3b9   :  { %1143 = vmatprep.subr.bf16.mxu1 %v1365_v0 }
 0x3bc   :  { %1144 = vmatpush3.bf16.msra.mxu1 %v1455_v15 }
 0x3bd   :  { %1145 = vmatprep.subr.bf16.mxu1 %v1365_v0 }
 0x3c0   :  { %1146 = vmatpush3.bf16.msra.mxu1 %v1460_v17 }
 0x463   :  { %v542_v1 = vpop.f32.mrf.mxu1 }
 0x464   :  { %v543_v3 = vadd.f32 %v542_v1, %v239_v63 }
 0x465   :  { %v1109_v5 = vpop.f32.mrf.mxu1 }
 0x466   :  { %1243 = vtanh.f32 %v543_v3 }
 0x467   :  { %v545_v7 = vpop.f32.mrf.mxu1 }
 0x469   :  { %v1110_v9 = vpop.f32.mrf.mxu1 }
 0x473   :  { %v1244_v11 = vpop.eup %1243 }
 0x474   :  { %v550_v12 = vpack.c.bf16 %v1244_v11, %v1244_v11 }
 0x476   :  { %1128 = vmatmul.mubr.bf16.vlgmr.msra.gmra.mxu0 %v550_v12 }
 0x477   :  { %1152 = vmatpush3.bf16.msra.mxu0 %v1433_v2  ;;  %1167 = vmatprep.mubr.msk.bf16.mxu0 %vm1366_vm0, %v1365_v0  ;;  %v1227_v2 = vld [vmem:[#allocation10 + $0x38] sm:$0xff]  }
 0x478   :  { %1153 = vmatprep.subr.bf16.mxu0 %v1365_v0  ;;  %1171 = vmatprep.subr.bf16.mxu1 %v1227_v2 }
 0x47b   :  { %1154 = vmatpush3.bf16.msra.mxu0 %v1436_v4  ;;  %v242_v4 = vadd.f32 %v1505_v24, %v1536_v38 }
 0x47c   :  { %1155 = vmatprep.subr.bf16.mxu0 %v1365_v0 }
 0x47f   :  { %1156 = vmatpush3.bf16.msra.mxu0 %v1440_v6 }
 0x480   :  { %1157 = vmatprep.subr.bf16.mxu0 %v1365_v0 }
 0x483   :  { %1158 = vmatpush3.bf16.msra.mxu0 %v1444_v8 }
 0x484   :  { %1159 = vmatprep.subr.bf16.mxu0 %v1365_v0 }
 0x487   :  { %1160 = vmatpush3.bf16.msra.mxu0 %v1447_v10 }
 0x488   :  { %1161 = vmatprep.subr.bf16.mxu0 %v1365_v0 }
 0x48b   :  { %1162 = vmatpush3.bf16.msra.mxu0 %v1451_v13 }
 0x48c   :  { %1163 = vmatprep.subr.bf16.mxu0 %v1365_v0 }
 0x48f   :  { %1164 = vmatpush3.bf16.msra.mxu0 %v1455_v15  ;;  %v694_v15 = vpack.c.bf16 %v1539_v45, %v1508_v31  ;;  %v250_v45 = vadd.f32 %v1534_v37, %v1505_v24 }
 0x490   :  { %1165 = vmatprep.subr.bf16.mxu0 %v1365_v0  ;;  %v1229_v0 = vld [vmem:[#allocation10 + $0x28] sm:$0xff]  }
 0x493   :  { %1166 = vmatpush3.bf16.msra.mxu0 %v1460_v17  ;;  %v1230_v17 = vld [vmem:[#allocation10 + $0x20] sm:$0xff]  }
 0x536   :  { %v587_v6 = vpop.f32.mrf.mxu0 }
 0x537   :  { %v588_v8 = vadd.f32 %v587_v6, %v242_v4 }
 0x538   :  { %v1129_v10 = vpop.f32.mrf.mxu0 }
 0x539   :  { %1245 = vtanh.f32 %v588_v8 }
 0x53a   :  { %v590_v14 = vpop.f32.mrf.mxu0 }
 0x53c   :  { %v1130_v16 = vpop.f32.mrf.mxu0 }
 0x546   :  { %v1246_v13 = vpop.eup %1245 }
 0x547   :  { %v595_v18 = vpack.c.bf16 %v1246_v13, %v1246_v13  ;;  %v696_v26 = vpack.c.bf16 %v1246_v13, %v1244_v11 }
 0x549   :  { %1148 = vmatmul.mubr.bf16.vlgmr.msra.gmra.mxu1 %v595_v18 }
 0x54a   :  { %1172 = vmatpush3.bf16.msra.mxu1 %v1227_v2  ;;  %1187 = vmatprep.mubr.bf16.mxu1 %v694_v15 }
 0x54b   :  { %1173 = vmatprep.subr.bf16.mxu1 %v1228_v19 }
 0x54e   :  { %1174 = vmatpush3.bf16.msra.mxu1 %v1228_v19 }
 0x54f   :  { %1175 = vmatprep.subr.bf16.mxu1 %v1229_v0 }
 0x552   :  { %1176 = vmatpush3.bf16.msra.mxu1 %v1229_v0 }
 0x553   :  { %1177 = vmatprep.subr.bf16.mxu1 %v1230_v17 }
 0x556   :  { %1178 = vmatpush3.bf16.msra.mxu1 %v1230_v17 }
 0x557   :  { %1179 = vmatprep.subr.bf16.mxu1 %v1231_v20 }
 0x55a   :  { %1180 = vmatpush3.bf16.msra.mxu1 %v1231_v20 }
 0x55b   :  { %1181 = vmatprep.subr.bf16.mxu1 %v1232_v21 }
 0x55e   :  { %1182 = vmatpush3.bf16.msra.mxu1 %v1232_v21 }
 0x55f   :  { %1183 = vmatprep.subr.bf16.mxu1 %v1233_v22 }
 0x562   :  { %1184 = vmatpush3.bf16.msra.mxu1 %v1233_v22 }
 0x563   :  { %1185 = vmatprep.subr.bf16.mxu1 %v1234_v23 }
 0x566   :  { %1186 = vmatpush3.bf16.msra.mxu1 %v1234_v23 }
 0x569   :  { %1188 = vmatmul.mubr.bf16.vlgmr.msra.gmra.mxu1 %v695_v25 }
 0x56a   :  { %1191 = vmatprep.mubr.bf16.mxu1 %v696_v26 }
 0x609   :  { %v632_v28 = vpop.f32.mrf.mxu1 }
 0x60a   :  { %v633_v29 = vadd.f32 %v632_v28, %v247_v27 }
 0x60b   :  { %v1149_v30 = vpop.f32.mrf.mxu1 }
 0x60c   :  { %1247 = vtanh.f32 %v633_v29 }
 0x60d   :  { %v635_v31 = vpop.f32.mrf.mxu1 }
 0x60f   :  { %v1150_v32 = vpop.f32.mrf.mxu1 }
 0x619   :  { %v1248_v33 = vpop.eup %1247 }
 0x61a   :  { %v640_v34 = vpack.c.bf16 %v1248_v33, %v1248_v33 }
 0x61c   :  { %1168 = vmatmul.mubr.bf16.vlgmr.msra.gmra.mxu0 %v640_v34 }
 0x629   :  { %v1189_v38 = vpop.f32.mrf.mxu1 }
 0x62a   :  { %v812_v39 = vadd.f32 %v1189_v38, %v882_v36 }
 0x62b   :  { %v803_v40 = vpop.f32.mrf.mxu1 }
 0x62c   :  { %836 = vst [vmem:[#allocation12 + $0x10] sm:$0xff] %v812_v39  ;;  %v804_v41 = vadd.f32 %v882_v36, %v803_v40 }
 0x62d   :  { %v1190_v42 = vpop.f32.mrf.mxu1 }
 0x62e   :  { %834 = vst [vmem:[#allocation12] sm:$0xff] %v804_v41  ;;  %v815_v35 = vadd.f32 %v1190_v42, %v882_v36 }
 0x62f   :  { %v806_v43 = vpop.f32.mrf.mxu1 }
 0x630   :  { %837 = vst [vmem:[#allocation12 + $0x18] sm:$0xff] %v815_v35  ;;  %v807_v44 = vadd.f32 %v882_v36, %v806_v43 }
 0x632   :  { %835 = vst [vmem:[#allocation12 + $0x8] sm:$0xff] %v807_v44 }
 0x6dc   :  { %v677_v46 = vpop.f32.mrf.mxu0 }
 0x6dd   :  { %v678_v47 = vadd.f32 %v677_v46, %v250_v45 }
 0x6de   :  { %v1169_v48 = vpop.f32.mrf.mxu0 }
 0x6df   :  { %1249 = vtanh.f32 %v678_v47 }
 0x6e0   :  { %v680_v49 = vpop.f32.mrf.mxu0 }
 0x6e2   :  { %v1170_v50 = vpop.f32.mrf.mxu0 }
 0x6ec   :  { %v1250_v51 = vpop.eup %1249 }
 0x6ed   :  { %v697_v52 = vpack.c.bf16 %v1250_v51, %v1248_v33 }
 0x6ef   :  { %1192 = vmatmul.mubr.bf16.gmra.mxu1 %v697_v52 }
 0x7af   :  { %v1193_v53 = vpop.f32.mrf.mxu1 }
 0x7b0   :  { %v828_v54 = vadd.f32 %v1193_v53, %v882_v36 }
 0x7b1   :  { %v819_v55 = vpop.f32.mrf.mxu1 }
 0x7b2   :  { %840 = vst [vmem:[#allocation12 + $0x30] sm:$0xff] %v828_v54  ;;  %v820_v56 = vadd.f32 %v882_v36, %v819_v55 }
 0x7b3   :  { %v1194_v57 = vpop.f32.mrf.mxu1 }
 0x7b4   :  { %838 = vst [vmem:[#allocation12 + $0x20] sm:$0xff] %v820_v56  ;;  %v831_v58 = vadd.f32 %v1194_v57, %v882_v36 }
 0x7b5   :  { %v822_v24 = vpop.f32.mrf.mxu1 }
 0x7b6   :  { %841 = vst [vmem:[#allocation12 + $0x38] sm:$0xff] %v831_v58  ;;  %v823_v37 = vadd.f32 %v882_v36, %v822_v24 }
 0x7b8   :  { %839 = vst [vmem:[#allocation12 + $0x28] sm:$0xff] %v823_v37 }
 0x7b9   :  { %1342 = shalt.err (!%p1339_p10)
}
 0x7ba   :  { %s1369_s20 = smov 128   ;;  %s1370_s21 = smov 8  }
 0x7bb   :  { %853 = dma.vmem_to_hbm [thread:$0]  %s848_s18, 1024, %s1647_s6, [#allocation6], %s1369_s20, %s1369_s20, %s1370_s21  }
 0x7bc   :  { %1357 = dma.done.wait [#allocation6], 1024  }
 0x7bd   :  { %1358 = vsyncadd [#allocation6], 4294966272 }
 0x7be   :  { %857 = vsyncpa [#allocation5], 1 }
 0x7bf   :  { %858 = vsyncpa [#allocation8], 1 }
 0x7c0   :  { %859 = vsyncpa [#allocation11], 1 }
 0x7c1   :  { %860 = vsyncpa [#allocation6], 1 }

</bundles_post_ra>
